<compile_context>
chip_gen: v7x
topology: tpu7x:2x2x1
jax: 0.10.0
libtpu: 0.0.40
codegen_flags: <defaults>
</compile_context>

<pallas_src>
import jax
import jax.numpy as jnp
from jax import lax
from jax.experimental import pallas as pl
from jax.experimental.pallas import tpu as pltpu


def attn_decoder_kernel(x_ref, w_ref, b_ref, wd_ref, wh_ref, c_ref, out_ref,
                        s_sc, o_sc, f_sc, u_sc):
    # x_ref : (TB*Bp, IN+H)  streamed [y | h] chunk, time-major rows
    # w_ref : (IN+H, 4H)     fused LSTM weights (i|f|g|o)
    # b_ref : (1, 4H)        bih + bhh
    # wd_ref/wh_ref : (1, H) fc2-folded-into-fc1 head weights (d / h_last part)
    # c_ref : (1, 1)         folded head bias
    # s_sc  : (Bp, H) f32    cell-state carry
    # o_sc  : (Bp, H) f32    o-gate of this chunk's last step
    # f_sc/u_sc : (TB, Bp, H) f32  per-step forget gate / update term i*g
    t = pl.program_id(0)
    TB, Bp, H = f_sc.shape
    IN = x_ref.shape[-1] - H
    N = TB * Bp

    @pl.when(t == 0)
    def _init():
        s_sc[...] = jnp.zeros_like(s_sc)

    # Chunk-batched gate matmul: gates depend only on the streamed inputs,
    # never on the carry, so M = TB*Bp fills the MXU in one shot.
    gates = (
        jnp.dot(x_ref[...], w_ref[...], preferred_element_type=jnp.float32)
        + b_ref[...]
    )                                         # (N, 4H), gate order i | f | g | o
    sig = jax.nn.sigmoid(gates)               # one full-tile EUP sweep
    tnh = jnp.tanh(gates)                     # one full-tile EUP sweep
    u = sig[:, 0:H] * tnh[:, 2 * H:3 * H]     # i * g  (bulk VPU)
    f_sc[...] = sig[:, H:2 * H].reshape(TB, Bp, H)
    u_sc[...] = u.reshape(TB, Bp, H)
    o_sc[...] = sig[N - Bp:N, 3 * H:4 * H]    # o gate of the chunk's last step

    # Residual serial work: elementwise cell-state scan over the chunk.
    def step(i, s):
        return f_sc[i] * s + u_sc[i]

    s = lax.fori_loop(0, TB, step, s_sc[...], unroll=min(TB, 8))
    s_sc[...] = s

    @pl.when(t == pl.num_programs(0) - 1)
    def _epilogue():
        # d_T = o_T * tanh(s_T); head = fc2(fc1(cat(d, h_last))) with fc2
        # folded into fc1 -> two length-H dot products (VPU mul + lane reduce).
        d = o_sc[...] * jnp.tanh(s)
        x_last = x_ref[N - Bp:N, :]
        h_last = x_last[:, IN:IN + H].astype(jnp.float32)
        out_ref[...] = (
            jnp.sum(d * wd_ref[...], axis=-1, keepdims=True)
            + jnp.sum(h_last * wh_ref[...], axis=-1, keepdims=True)
            + c_ref[...]
        )


def _pick_time_block(T, cap=256):
    """Largest chunk length <= cap that divides T (whole sequence if T <= cap).
    The per-chunk scan is a fori_loop, so large chunks do not blow up code size."""
    if T <= cap:
        return T
    best = 1
    for d in range(cap, 0, -1):
        if T % d == 0:
            best = d
            break
    if best < 8 and T <= 4096:
        return T   # no good divisor: run the whole sequence as one chunk
    return best


def attn_decoder_forward(params, h, y_seq, *, matmul_dtype=jnp.float32,
                         time_cap=256):
    """Pallas forward of AttnDecoder.  h: (B, T, H), y_seq: (B, T, 6).

    `matmul_dtype=jnp.bfloat16` halves streamed HBM/VMEM bytes on v6e/v7x
    (the gate matmul accumulates in f32 and all elementwise math stays f32);
    keep the f32 default on v5e."""
    B, T, H = h.shape
    y_seq = y_seq[:B]                       # mirror of the module's batch guard
    IN = y_seq.shape[-1]
    D = IN + H

    wih, whh, bih, bhh = params["lstm"]     # (4H,6),(4H,H),(4H,),(4H,)
    f1w, f1b = params["fc1"]                # (H, 2H), (H,)
    f2w, f2b = params["fc2"]                # (1, H), (1,)

    # --- one-off wrapper-side layout / fusion prep --------------------------
    sub = 16 if jnp.dtype(matmul_dtype).itemsize < 4 else 8
    Bp = ((B + sub - 1) // sub) * sub       # pad batch to a sublane multiple

    # [y | h] concatenated (one lane-dense gate matmul, DMA-friendly rows),
    # time-major so each scan step is a contiguous (Bp, H) tile, then rows
    # flattened so the in-kernel matmul needs no reshape.
    x = jnp.concatenate([y_seq, h], axis=-1)          # (B, T, D)
    x = jnp.transpose(x, (1, 0, 2))                   # (T, B, D)
    if Bp != B:
        x = jnp.pad(x, ((0, 0), (0, Bp - B), (0, 0)))
    x_flat = x.reshape(T * Bp, D).astype(matmul_dtype)

    # Fused LSTM weights (PyTorch i|f|g|o order), biases pre-added.
    w_fused = jnp.concatenate([wih.T, whh.T], axis=0).astype(matmul_dtype)  # (D,4H)
    bias = (bih + bhh).reshape(1, 4 * H).astype(jnp.float32)

    # Fold fc2 into fc1: out = d @ Wd + h_last @ Wh + c.
    w_head = (f1w.T @ f2w.T).astype(jnp.float32)      # (2H, 1)
    wd = w_head[:H, 0].reshape(1, H)
    wh = w_head[H:, 0].reshape(1, H)
    c = (f1b @ f2w.T + f2b).reshape(1, 1).astype(jnp.float32)

    TB = _pick_time_block(T, time_cap)
    n_blocks = T // TB

    const2 = lambda t: (0, 0)
    grid_spec = pltpu.PrefetchScalarGridSpec(
        num_scalar_prefetch=0,
        grid=(n_blocks,),
        in_specs=[
            pl.BlockSpec((TB * Bp, D), lambda t: (t, 0)),   # streamed [y|h] chunk
            pl.BlockSpec(w_fused.shape, const2),            # weights stay resident
            pl.BlockSpec(bias.shape, const2),
            pl.BlockSpec(wd.shape, const2),
            pl.BlockSpec(wh.shape, const2),
            pl.BlockSpec(c.shape, const2),
        ],
        out_specs=pl.BlockSpec((Bp, 1), const2),
        scratch_shapes=[
            pltpu.VMEM((Bp, H), jnp.float32),       # s carry (cell state)
            pltpu.VMEM((Bp, H), jnp.float32),       # o gate of chunk's last step
            pltpu.VMEM((TB, Bp, H), jnp.float32),   # forget gates of the chunk
            pltpu.VMEM((TB, Bp, H), jnp.float32),   # update term i*g of the chunk
        ],
    )

    out = pl.pallas_call(
        attn_decoder_kernel,
        out_shape=jax.ShapeDtypeStruct((Bp, 1), jnp.float32),
        grid_spec=grid_spec,
        compiler_params=pltpu.CompilerParams(
            dimension_semantics=("arbitrary",),   # serial recurrence over time
        ),
    )(x_flat, w_fused, bias, wd, wh, c)

    return out[:B]


def init_params(key, code_hidden_size, hidden_size, input_size=6):
    H, CH = hidden_size, code_hidden_size

    def lin(k, out_f, in_f):
        kw, kb = jax.random.split(k)
        bound = 1.0 / (in_f ** 0.5)
        w = jax.random.uniform(kw, (out_f, in_f), jnp.float32, -bound, bound)
        b = jax.random.uniform(kb, (out_f,), jnp.float32, -bound, bound)
        return w, b

    keys = jax.random.split(key, 6)
    params = {
        "attn1": lin(keys[0], CH, 2 * H),
        "attn2": lin(keys[1], CH, CH),
        "attn3": lin(keys[2], 1, CH),
        "fc1": lin(keys[3], H, CH + H),
        "fc2": lin(keys[4], 1, H),
    }
    kih, khh, kbi, kbh = jax.random.split(keys[5], 4)
    bound = 1.0 / (H ** 0.5)
    params["lstm"] = (
        jax.random.uniform(kih, (4 * H, input_size), jnp.float32, -bound, bound),
        jax.random.uniform(khh, (4 * H, H), jnp.float32, -bound, bound),
        jax.random.uniform(kbi, (4 * H,), jnp.float32, -bound, bound),
        jax.random.uniform(kbh, (4 * H,), jnp.float32, -bound, bound),
    )
    return params


def attn_decoder_reference(params, h, y_seq):
    # Pure-JAX mirror of the PyTorch forward, including the (mathematically
    # identity) attention branch, for the numerical check.
    B, T, H = h.shape
    h_ = jnp.transpose(h, (1, 0, 2))
    a1w, a1b = params["attn1"]
    a2w, a2b = params["attn2"]
    a3w, a3b = params["attn3"]
    wih, whh, bih, bhh = params["lstm"]
    f1w, f1b = params["fc1"]
    f2w, f2b = params["fc2"]
    d = jnp.zeros((B, H), jnp.float32)
    s = jnp.zeros((B, H), jnp.float32)
    for t in range(T):
        x = jnp.concatenate([d, h_[t]], axis=1)
        a1 = x @ a1w.T + a1b
        a2 = a1 @ a2w.T + a2b
        a = jnp.tanh(a2) @ a3w.T + a3b
        aw = jax.nn.softmax(a[None], axis=0)[0]      # softmax over singleton dim
        h1 = aw * h_[t]
        gates = y_seq[:, t] @ wih.T + bih + h1 @ whh.T + bhh
        i = jax.nn.sigmoid(gates[:, :H])
        f = jax.nn.sigmoid(gates[:, H:2 * H])
        g = jnp.tanh(gates[:, 2 * H:3 * H])
        o = jax.nn.sigmoid(gates[:, 3 * H:])
        s = f * s + i * g
        d = o * jnp.tanh(s)
    z = jnp.concatenate([d, h_[-1]], axis=1)
    return (z @ f1w.T + f1b) @ f2w.T + f2b


if __name__ == "__main__":
    # code_hidden_size == hidden_size (required by the module's own shapes)
    B, T, H, CH, IN = 2, 8, 32, 32, 6
    key = jax.random.PRNGKey(0)
    kp, kh, ky = jax.random.split(key, 3)
    params = init_params(kp, CH, H, IN)
    h = jax.random.normal(kh, (B, T, H), jnp.float32)
    y_seq = jax.random.normal(ky, (B, T, IN), jnp.float32)

    ref = jax.block_until_ready(attn_decoder_reference(params, h, y_seq))

    out = jax.block_until_ready(attn_decoder_forward(params, h, y_seq))
    assert out.shape == (B, 1)
    if not jnp.allclose(out, ref, atol=1e-4, rtol=1e-4):
        raise AssertionError(f"f32 kernel vs reference mismatch:\n{out}\n{ref}")

    # Reduced-precision streaming path (v6e/v7x-friendly); f32 accumulation.
    out_bf16 = jax.block_until_ready(
        attn_decoder_forward(params, h, y_seq, matmul_dtype=jnp.bfloat16))
    if not jnp.allclose(out_bf16, ref, atol=1e-1, rtol=1e-1):
        raise AssertionError(f"bf16 kernel vs reference mismatch:\n{out_bf16}\n{ref}")

    print("KERNEL_OK")
</pallas_src>

<mosaic_0001>
module attributes {stable_mosaic.version = 11 : i64} {
  func.func @attn_decoder_kernel(%arg0: i32, %arg1: memref<64x38xf32, #tpu.memory_space<vmem>>, %arg2: memref<38x128xf32, #tpu.memory_space<vmem>>, %arg3: memref<1x128xf32, #tpu.memory_space<vmem>>, %arg4: memref<1x32xf32, #tpu.memory_space<vmem>>, %arg5: memref<1x32xf32, #tpu.memory_space<vmem>>, %arg6: memref<1x1xf32, #tpu.memory_space<vmem>>, %arg7: memref<8x1xf32, #tpu.memory_space<vmem>>, %arg8: memref<8x32xf32, #tpu.memory_space<vmem>>, %arg9: memref<8x32xf32, #tpu.memory_space<vmem>>, %arg10: memref<8x8x32xf32, #tpu.memory_space<vmem>>, %arg11: memref<8x8x32xf32, #tpu.memory_space<vmem>>) attributes {dimension_semantics = [#tpu.dimension_semantics<arbitrary>], iteration_bounds = array<i64: 1>, scalar_prefetch = 0 : i64, scratch_operands = 4 : i64, tpu.core_type = #tpu.core_type<tc>, window_params = [{transform_indices = @transform_0, window_bounds = array<i64: 64, 38>}, {pipeline_mode = #tpu.pipeline_mode<synchronous>, transform_indices = @transform_1, window_bounds = array<i64: 38, 128>}, {pipeline_mode = #tpu.pipeline_mode<synchronous>, transform_indices = @transform_2, window_bounds = array<i64: 1, 128>}, {pipeline_mode = #tpu.pipeline_mode<synchronous>, transform_indices = @transform_3, window_bounds = array<i64: 1, 32>}, {pipeline_mode = #tpu.pipeline_mode<synchronous>, transform_indices = @transform_4, window_bounds = array<i64: 1, 32>}, {pipeline_mode = #tpu.pipeline_mode<synchronous>, transform_indices = @transform_5, window_bounds = array<i64: 1, 1>}, {pipeline_mode = #tpu.pipeline_mode<synchronous>, transform_indices = @transform_6, window_bounds = array<i64: 8, 1>}]} {
    %c0_i32 = arith.constant 0 : i32
    %0 = arith.cmpi eq, %arg0, %c0_i32 : i32
    %1 = arith.extui %0 : i1 to i32
    %c0_i32_0 = arith.constant 0 : i32
    %2 = arith.cmpi ne, %1, %c0_i32_0 : i32
    scf.if %2 {
      %cst_54 = arith.constant 0.000000e+00 : f32
      %94 = vector.broadcast %cst_54 : f32 to vector<8x32xf32>
      %c0_55 = arith.constant 0 : index
      %c0_56 = arith.constant 0 : index
      %95 = vector.load %arg8[%c0_55, %c0_56] : memref<8x32xf32, #tpu.memory_space<vmem>>, vector<8x32xf32>
      tpu.vector_store %arg8[%c0_55, %c0_56], %94 {strides = array<i32>} : memref<8x32xf32, #tpu.memory_space<vmem>>, vector<8x32xf32>,
    } else {
    }
    %c0 = arith.constant 0 : index
    %c0_1 = arith.constant 0 : index
    %3 = vector.load %arg1[%c0, %c0_1] : memref<64x38xf32, #tpu.memory_space<vmem>>, vector<64x38xf32>
    %c0_2 = arith.constant 0 : index
    %c0_3 = arith.constant 0 : index
    %4 = vector.load %arg2[%c0_2, %c0_3] : memref<38x128xf32, #tpu.memory_space<vmem>>, vector<38x128xf32>
    %cst = arith.constant dense<0.000000e+00> : vector<64x128xf32>
    %5 = tpu.matmul %3, %4, %cst {dimension_numbers = #tpu.dot_dimension_numbers<[1], [0], [0], [1], [0, 0, 1, 1], [], []>} : vector<64x38xf32>, vector<38x128xf32>, vector<64x128xf32> -> vector<64x128xf32>
    %c0_4 = arith.constant 0 : index
    %c0_5 = arith.constant 0 : index
    %6 = vector.load %arg3[%c0_4, %c0_5] : memref<1x128xf32, #tpu.memory_space<vmem>>, vector<1x128xf32>
    %7 = vector.broadcast %6 : vector<1x128xf32> to vector<64x128xf32>
    %8 = arith.addf %5, %7 : vector<64x128xf32>
    %9 = arith.negf %8 : vector<64x128xf32>
    %10 = math.exp %9 : vector<64x128xf32>
    %cst_6 = arith.constant 1.000000e+00 : f32
    %11 = vector.broadcast %cst_6 : f32 to vector<64x128xf32>
    %12 = arith.addf %11, %10 : vector<64x128xf32>
    %13 = arith.divf %11, %12 : vector<64x128xf32>
    %14 = math.tanh %8 : vector<64x128xf32>
    %15 = vector.extract_strided_slice %13 {offsets = [0, 0], sizes = [64, 32], strides = [1, 1]} : vector<64x128xf32> to vector<64x32xf32>
    %16 = vector.extract_strided_slice %14 {offsets = [0, 64], sizes = [64, 32], strides = [1, 1]} : vector<64x128xf32> to vector<64x32xf32>
    %17 = arith.mulf %15, %16 : vector<64x32xf32>
    %18 = vector.extract_strided_slice %13 {offsets = [0, 32], sizes = [64, 32], strides = [1, 1]} : vector<64x128xf32> to vector<64x32xf32>
    %19 = vector.shape_cast %18 : vector<64x32xf32> to vector<8x8x32xf32>
    %c0_7 = arith.constant 0 : index
    %c0_8 = arith.constant 0 : index
    %c0_9 = arith.constant 0 : index
    %20 = vector.load %arg10[%c0_7, %c0_8, %c0_9] : memref<8x8x32xf32, #tpu.memory_space<vmem>>, vector<8x8x32xf32>
    tpu.vector_store %arg10[%c0_7, %c0_8, %c0_9], %19 {strides = array<i32>} : memref<8x8x32xf32, #tpu.memory_space<vmem>>, vector<8x8x32xf32>,
    %21 = vector.shape_cast %17 : vector<64x32xf32> to vector<8x8x32xf32>
    %c0_10 = arith.constant 0 : index
    %c0_11 = arith.constant 0 : index
    %c0_12 = arith.constant 0 : index
    %22 = vector.load %arg11[%c0_10, %c0_11, %c0_12] : memref<8x8x32xf32, #tpu.memory_space<vmem>>, vector<8x8x32xf32>
    tpu.vector_store %arg11[%c0_10, %c0_11, %c0_12], %21 {strides = array<i32>} : memref<8x8x32xf32, #tpu.memory_space<vmem>>, vector<8x8x32xf32>,
    %23 = vector.extract_strided_slice %13 {offsets = [56, 96], sizes = [8, 32], strides = [1, 1]} : vector<64x128xf32> to vector<8x32xf32>
    %c0_13 = arith.constant 0 : index
    %c0_14 = arith.constant 0 : index
    %24 = vector.load %arg9[%c0_13, %c0_14] : memref<8x32xf32, #tpu.memory_space<vmem>>, vector<8x32xf32>
    tpu.vector_store %arg9[%c0_13, %c0_14], %23 {strides = array<i32>} : memref<8x32xf32, #tpu.memory_space<vmem>>, vector<8x32xf32>,
    %c0_15 = arith.constant 0 : index
    %c0_16 = arith.constant 0 : index
    %25 = vector.load %arg8[%c0_15, %c0_16] : memref<8x32xf32, #tpu.memory_space<vmem>>, vector<8x32xf32>
    %c0_i32_17 = arith.constant 0 : i32
    %26 = arith.index_cast %c0_i32_17 : i32 to index
    %c0_18 = arith.constant 0 : index
    %c0_19 = arith.constant 0 : index
    %27 = vector.load %arg10[%26, %c0_18, %c0_19] : memref<8x8x32xf32, #tpu.memory_space<vmem>>, vector<1x8x32xf32>
    %28 = vector.shape_cast %27 : vector<1x8x32xf32> to vector<8x32xf32>
    %29 = arith.mulf %28, %25 : vector<8x32xf32>
    %30 = arith.index_cast %c0_i32_17 : i32 to index
    %c0_20 = arith.constant 0 : index
    %c0_21 = arith.constant 0 : index
    %31 = vector.load %arg11[%30, %c0_20, %c0_21] : memref<8x8x32xf32, #tpu.memory_space<vmem>>, vector<1x8x32xf32>
    %32 = vector.shape_cast %31 : vector<1x8x32xf32> to vector<8x32xf32>
    %33 = arith.addf %29, %32 : vector<8x32xf32>
    %c1_i32 = arith.constant 1 : i32
    %34 = arith.index_cast %c1_i32 : i32 to index
    %c0_22 = arith.constant 0 : index
    %c0_23 = arith.constant 0 : index
    %35 = vector.load %arg10[%34, %c0_22, %c0_23] : memref<8x8x32xf32, #tpu.memory_space<vmem>>, vector<1x8x32xf32>
    %36 = vector.shape_cast %35 : vector<1x8x32xf32> to vector<8x32xf32>
    %37 = arith.mulf %36, %33 : vector<8x32xf32>
    %38 = arith.index_cast %c1_i32 : i32 to index
    %c0_24 = arith.constant 0 : index
    %c0_25 = arith.constant 0 : index
    %39 = vector.load %arg11[%38, %c0_24, %c0_25] : memref<8x8x32xf32, #tpu.memory_space<vmem>>, vector<1x8x32xf32>
    %40 = vector.shape_cast %39 : vector<1x8x32xf32> to vector<8x32xf32>
    %41 = arith.addf %37, %40 : vector<8x32xf32>
    %c2_i32 = arith.constant 2 : i32
    %42 = arith.index_cast %c2_i32 : i32 to index
    %c0_26 = arith.constant 0 : index
    %c0_27 = arith.constant 0 : index
    %43 = vector.load %arg10[%42, %c0_26, %c0_27] : memref<8x8x32xf32, #tpu.memory_space<vmem>>, vector<1x8x32xf32>
    %44 = vector.shape_cast %43 : vector<1x8x32xf32> to vector<8x32xf32>
    %45 = arith.mulf %44, %41 : vector<8x32xf32>
    %46 = arith.index_cast %c2_i32 : i32 to index
    %c0_28 = arith.constant 0 : index
    %c0_29 = arith.constant 0 : index
    %47 = vector.load %arg11[%46, %c0_28, %c0_29] : memref<8x8x32xf32, #tpu.memory_space<vmem>>, vector<1x8x32xf32>
    %48 = vector.shape_cast %47 : vector<1x8x32xf32> to vector<8x32xf32>
    %49 = arith.addf %45, %48 : vector<8x32xf32>
    %c3_i32 = arith.constant 3 : i32
    %50 = arith.index_cast %c3_i32 : i32 to index
    %c0_30 = arith.constant 0 : index
    %c0_31 = arith.constant 0 : index
    %51 = vector.load %arg10[%50, %c0_30, %c0_31] : memref<8x8x32xf32, #tpu.memory_space<vmem>>, vector<1x8x32xf32>
    %52 = vector.shape_cast %51 : vector<1x8x32xf32> to vector<8x32xf32>
    %53 = arith.mulf %52, %49 : vector<8x32xf32>
    %54 = arith.index_cast %c3_i32 : i32 to index
    %c0_32 = arith.constant 0 : index
    %c0_33 = arith.constant 0 : index
    %55 = vector.load %arg11[%54, %c0_32, %c0_33] : memref<8x8x32xf32, #tpu.memory_space<vmem>>, vector<1x8x32xf32>
    %56 = vector.shape_cast %55 : vector<1x8x32xf32> to vector<8x32xf32>
    %57 = arith.addf %53, %56 : vector<8x32xf32>
    %c4_i32 = arith.constant 4 : i32
    %58 = arith.index_cast %c4_i32 : i32 to index
    %c0_34 = arith.constant 0 : index
    %c0_35 = arith.constant 0 : index
    %59 = vector.load %arg10[%58, %c0_34, %c0_35] : memref<8x8x32xf32, #tpu.memory_space<vmem>>, vector<1x8x32xf32>
    %60 = vector.shape_cast %59 : vector<1x8x32xf32> to vector<8x32xf32>
    %61 = arith.mulf %60, %57 : vector<8x32xf32>
    %62 = arith.index_cast %c4_i32 : i32 to index
    %c0_36 = arith.constant 0 : index
    %c0_37 = arith.constant 0 : index
    %63 = vector.load %arg11[%62, %c0_36, %c0_37] : memref<8x8x32xf32, #tpu.memory_space<vmem>>, vector<1x8x32xf32>
    %64 = vector.shape_cast %63 : vector<1x8x32xf32> to vector<8x32xf32>
    %65 = arith.addf %61, %64 : vector<8x32xf32>
    %c5_i32 = arith.constant 5 : i32
    %66 = arith.index_cast %c5_i32 : i32 to index
    %c0_38 = arith.constant 0 : index
    %c0_39 = arith.constant 0 : index
    %67 = vector.load %arg10[%66, %c0_38, %c0_39] : memref<8x8x32xf32, #tpu.memory_space<vmem>>, vector<1x8x32xf32>
    %68 = vector.shape_cast %67 : vector<1x8x32xf32> to vector<8x32xf32>
    %69 = arith.mulf %68, %65 : vector<8x32xf32>
    %70 = arith.index_cast %c5_i32 : i32 to index
    %c0_40 = arith.constant 0 : index
    %c0_41 = arith.constant 0 : index
    %71 = vector.load %arg11[%70, %c0_40, %c0_41] : memref<8x8x32xf32, #tpu.memory_space<vmem>>, vector<1x8x32xf32>
    %72 = vector.shape_cast %71 : vector<1x8x32xf32> to vector<8x32xf32>
    %73 = arith.addf %69, %72 : vector<8x32xf32>
    %c6_i32 = arith.constant 6 : i32
    %74 = arith.index_cast %c6_i32 : i32 to index
    %c0_42 = arith.constant 0 : index
    %c0_43 = arith.constant 0 : index
    %75 = vector.load %arg10[%74, %c0_42, %c0_43] : memref<8x8x32xf32, #tpu.memory_space<vmem>>, vector<1x8x32xf32>
    %76 = vector.shape_cast %75 : vector<1x8x32xf32> to vector<8x32xf32>
    %77 = arith.mulf %76, %73 : vector<8x32xf32>
    %78 = arith.index_cast %c6_i32 : i32 to index
    %c0_44 = arith.constant 0 : index
    %c0_45 = arith.constant 0 : index
    %79 = vector.load %arg11[%78, %c0_44, %c0_45] : memref<8x8x32xf32, #tpu.memory_space<vmem>>, vector<1x8x32xf32>
    %80 = vector.shape_cast %79 : vector<1x8x32xf32> to vector<8x32xf32>
    %81 = arith.addf %77, %80 : vector<8x32xf32>
    %c7_i32 = arith.constant 7 : i32
    %82 = arith.index_cast %c7_i32 : i32 to index
    %c0_46 = arith.constant 0 : index
    %c0_47 = arith.constant 0 : index
    %83 = vector.load %arg10[%82, %c0_46, %c0_47] : memref<8x8x32xf32, #tpu.memory_space<vmem>>, vector<1x8x32xf32>
    %84 = vector.shape_cast %83 : vector<1x8x32xf32> to vector<8x32xf32>
    %85 = arith.mulf %84, %81 : vector<8x32xf32>
    %86 = arith.index_cast %c7_i32 : i32 to index
    %c0_48 = arith.constant 0 : index
    %c0_49 = arith.constant 0 : index
    %87 = vector.load %arg11[%86, %c0_48, %c0_49] : memref<8x8x32xf32, #tpu.memory_space<vmem>>, vector<1x8x32xf32>
    %88 = vector.shape_cast %87 : vector<1x8x32xf32> to vector<8x32xf32>
    %89 = arith.addf %85, %88 : vector<8x32xf32>
    %c8_i32 = arith.constant 8 : i32
    %c0_50 = arith.constant 0 : index
    %c0_51 = arith.constant 0 : index
    %90 = vector.load %arg8[%c0_50, %c0_51] : memref<8x32xf32, #tpu.memory_space<vmem>>, vector<8x32xf32>
    tpu.vector_store %arg8[%c0_50, %c0_51], %89 {strides = array<i32>} : memref<8x32xf32, #tpu.memory_space<vmem>>, vector<8x32xf32>,
    %c0_i32_52 = arith.constant 0 : i32
    %91 = arith.cmpi eq, %arg0, %c0_i32_52 : i32
    %92 = arith.extui %91 : i1 to i32
    %c0_i32_53 = arith.constant 0 : i32
    %93 = arith.cmpi ne, %92, %c0_i32_53 : i32
    scf.if %93 {
      %c0_54 = arith.constant 0 : index
      %c0_55 = arith.constant 0 : index
      %94 = vector.load %arg9[%c0_54, %c0_55] : memref<8x32xf32, #tpu.memory_space<vmem>>, vector<8x32xf32>
      %95 = math.tanh %89 : vector<8x32xf32>
      %96 = arith.mulf %94, %95 : vector<8x32xf32>
      %c56 = arith.constant 56 : index
      %c0_56 = arith.constant 0 : index
      %97 = vector.load %arg1[%c56, %c0_56] : memref<64x38xf32, #tpu.memory_space<vmem>>, vector<8x38xf32>
      %98 = vector.extract_strided_slice %97 {offsets = [0, 6], sizes = [8, 32], strides = [1, 1]} : vector<8x38xf32> to vector<8x32xf32>
      %c0_57 = arith.constant 0 : index
      %c0_58 = arith.constant 0 : index
      %99 = vector.load %arg4[%c0_57, %c0_58] : memref<1x32xf32, #tpu.memory_space<vmem>>, vector<1x32xf32>
      %100 = vector.broadcast %99 : vector<1x32xf32> to vector<8x32xf32>
      %101 = arith.mulf %96, %100 : vector<8x32xf32>
      %cst_59 = arith.constant dense<0.000000e+00> : vector<8xf32>
      %102 = vector.multi_reduction <add>, %101, %cst_59 [1] : vector<8x32xf32> to vector<8xf32>
      %103 = vector.shape_cast %102 : vector<8xf32> to vector<8x1xf32>
      %c0_60 = arith.constant 0 : index
      %c0_61 = arith.constant 0 : index
      %104 = vector.load %arg5[%c0_60, %c0_61] : memref<1x32xf32, #tpu.memory_space<vmem>>, vector<1x32xf32>
      %105 = vector.broadcast %104 : vector<1x32xf32> to vector<8x32xf32>
      %106 = arith.mulf %98, %105 : vector<8x32xf32>
      %cst_62 = arith.constant dense<0.000000e+00> : vector<8xf32>
      %107 = vector.multi_reduction <add>, %106, %cst_62 [1] : vector<8x32xf32> to vector<8xf32>
      %108 = vector.shape_cast %107 : vector<8xf32> to vector<8x1xf32>
      %109 = arith.addf %103, %108 : vector<8x1xf32>
      %c0_63 = arith.constant 0 : index
      %c0_64 = arith.constant 0 : index
      %110 = vector.load %arg6[%c0_63, %c0_64] : memref<1x1xf32, #tpu.memory_space<vmem>>, vector<1x1xf32>
      %111 = vector.broadcast %110 : vector<1x1xf32> to vector<8x1xf32>
      %112 = arith.addf %109, %111 : vector<8x1xf32>
      %c0_65 = arith.constant 0 : index
      %c0_66 = arith.constant 0 : index
      %113 = vector.load %arg7[%c0_65, %c0_66] : memref<8x1xf32, #tpu.memory_space<vmem>>, vector<8x1xf32>
      tpu.vector_store %arg7[%c0_65, %c0_66], %112 {strides = array<i32>} : memref<8x1xf32, #tpu.memory_space<vmem>>, vector<8x1xf32>,
    } else {
    }
    return
  }
  func.func @transform_0(%arg0: i32) -> (i32, i32) {
    %c0_i32 = arith.constant 0 : i32
    %c0_i32_0 = arith.constant 0 : i32
    return %arg0, %c0_i32 : i32, i32
  }
  func.func @transform_1(%arg0: i32) -> (i32, i32) {
    %c0_i32 = arith.constant 0 : i32
    %c0_i32_0 = arith.constant 0 : i32
    %c0_i32_1 = arith.constant 0 : i32
    return %c0_i32, %c0_i32_0 : i32, i32
  }
  func.func @transform_2(%arg0: i32) -> (i32, i32) {
    %c0_i32 = arith.constant 0 : i32
    %c0_i32_0 = arith.constant 0 : i32
    %c0_i32_1 = arith.constant 0 : i32
    return %c0_i32, %c0_i32_0 : i32, i32
  }
  func.func @transform_3(%arg0: i32) -> (i32, i32) {
    %c0_i32 = arith.constant 0 : i32
    %c0_i32_0 = arith.constant 0 : i32
    %c0_i32_1 = arith.constant 0 : i32
    return %c0_i32, %c0_i32_0 : i32, i32
  }
  func.func @transform_4(%arg0: i32) -> (i32, i32) {
    %c0_i32 = arith.constant 0 : i32
    %c0_i32_0 = arith.constant 0 : i32
    %c0_i32_1 = arith.constant 0 : i32
    return %c0_i32, %c0_i32_0 : i32, i32
  }
  func.func @transform_5(%arg0: i32) -> (i32, i32) {
    %c0_i32 = arith.constant 0 : i32
    %c0_i32_0 = arith.constant 0 : i32
    %c0_i32_1 = arith.constant 0 : i32
    return %c0_i32, %c0_i32_0 : i32, i32
  }
  func.func @transform_6(%arg0: i32) -> (i32, i32) {
    %c0_i32 = arith.constant 0 : i32
    %c0_i32_0 = arith.constant 0 : i32
    %c0_i32_1 = arith.constant 0 : i32
    return %c0_i32, %c0_i32_0 : i32, i32
  }
}

</mosaic_0001>

<bundles_post_ra>
// kernel: tpu_custom_call.1
= control target key start
LH: loop header
LB: loop body
LE: loop exit
PB: predicated region body
PF: predicated region fallthrough
CT: control target
= control target key end

     0   :  { %vm51_vm0 = vcmask 310272   ;;  %vm76_vm1 = vcmask 1045504   ;;  %s558_s13 = smov 6   ;;  %vm29_vm2 = vcmask 261120   ;;  %v560_v45 = vmov 0.0   ;;  %s562_s26 = smov 122   ;;  %s719_s1 = inlined_call_operand.vmem [shape: f32[38,128], index: 1, kind: input, shape index: {}]   ;;  %s720_s0 = inlined_call_operand.vmem [shape: f32[64,38], index: 0, kind: input, shape index: {}]   ;;  %s721_s4 = inlined_call_operand.vmem [shape: f32[1,32], index: 4, kind: input, shape index: {}]   ;;  %s722_s2 = inlined_call_operand.vmem [shape: f32[1,128], index: 2, kind: input, shape index: {}]   ;;  %s723_s5 = inlined_call_operand.<no memory space> [shape: f32[1,1], index: 5, kind: input, shape index: {}]   ;;  %s724_s3 = inlined_call_operand.vmem [shape: f32[1,32], index: 3, kind: input, shape index: {}]   ;;  %s725_s6 = inlined_call_operand.vmem [shape: f32[8,1], index: 6, kind: output, shape index: {}]  }
   0x1   :  { %v39_v0 = vld [vmem:[%s719_s1] sm:$0xff]  ;;  %v40_v1 = vld [vmem:[%s719_s1 + $0x8] sm:$0xff]  ;;  %v41_v2 = vld [vmem:[%s719_s1 + $0x10] sm:$0xff]  ;;  %30 = vst.msk [vmem:[#allocation2] sm:$0xff] %vm29_vm2, %v560_v45  ;;  %s563_s27 = smov 32   ;;  %vm426_vm3 = vcmask 7168  }
   0x2   :  { %v488_v3 = vpack.c.bf16 %v40_v1, %v39_v0  ;;  %v42_v4 = vld [vmem:[%s719_s1 + $0x18] sm:$0xff]  ;;  %v31_v5 = vld [vmem:[%s720_s0] sm:$0xff]  ;;  %v32_v10 = vld [vmem:[%s720_s0 + $0x8] sm:$0xff] }
   0x3   :  { %v492_v6 = vpack.c.bf16 %v42_v4, %v41_v2  ;;  %476 = vmatprep.mubr.msk.f32.mxu0 %vm51_vm0, %v31_v5  ;;  %v35_v7 = vld [vmem:[%s720_s0 + $0x20] sm:$0xff]  ;;  %v36_v11 = vld [vmem:[%s720_s0 + $0x28] sm:$0xff]  ;;  %v33_v12 = vld [vmem:[%s720_s0 + $0x10] sm:$0xff] }
   0x4   :  { %489 = vmatprep.subr.bf16.mxu0 %v488_v3  ;;  %496 = vmatprep.subr.bf16.mxu1 %v488_v3  ;;  %v451_v8 = vld [vmem:[%s721_s4] ss:$0 sm:$0xff]  ;;  %v37_v13 = vld [vmem:[%s720_s0 + $0x30] sm:$0xff]  ;;  %v34_v14 = vld [vmem:[%s720_s0 + $0x18] sm:$0xff] }
   0x5   :  { %491 = vmatpush3.bf16.msra.mxu0 %v488_v3  ;;  %499 = vmatpush3.bf16.msra.mxu1 %v488_v3  ;;  %v43_v9 = vld [vmem:[%s719_s1 + $0x20] sm:$0x3f]  ;;  %v647_v15 = vld [vmem:[%s720_s0 + $0x38] sm:$0xff]  ;;  %s559_s0 = smov 64  }
   0x6   :  { %493 = vmatprep.subr.bf16.mxu0 %v492_v6  ;;  %497 = vmatprep.subr.bf16.mxu1 %v492_v6  ;;  %v432_v16 = vld [vmem:[%s722_s2] ss:$0 sm:$0xff]  ;;  %s561_s2 = smov 96  }
   0x7   :  { %482 = vmatprep.mubr.msk.f32.mxu1 %vm51_vm0, %v35_v7  ;;  %406 = vrot.lane.b32.xlu0 %v451_v8, %s558_s13 }
   0x9   :  { %495 = vmatpush3.bf16.msra.mxu0 %v492_v6  ;;  %500 = vmatpush3.bf16.msra.mxu1 %v492_v6 }
   0xa   :  { %474 = vmatprep.subr.msk.mxu0 %vm76_vm1, %v43_v9  ;;  %498 = vmatprep.subr.msk.mxu1 %vm76_vm1, %v43_v9 }
   0xd   :  { %475 = vmatpush3.msk.msra.mxu0 %vm76_vm1, %v43_v9  ;;  %501 = vmatpush3.msk.msra.mxu1 %vm76_vm1, %v43_v9 }
   0xe   :  { %477 = vmatmul.mubr.msk.f32.vlgmr.msra.gmra.mrb[0].mxu0 %vm51_vm0, %v32_v10  ;;  %483 = vmatmul.mubr.msk.f32.vlgmr.msra.gmra.mrb[0].mxu1 %vm51_vm0, %v36_v11 }
   0xf   :  { %479 = vmatprep.mubr.msk.f32.mxu0 %vm51_vm0, %v33_v12  ;;  %485 = vmatprep.mubr.msk.f32.mxu1 %vm51_vm0, %v37_v13 }
  0x12   :  { %480 = vmatmul.mubr.msk.f32.gmra.mrb[2].mxu0 %vm51_vm0, %v34_v14  ;;  %486 = vmatmul.mubr.msk.f32.gmra.mrb[2].mxu1 %vm51_vm0, %v647_v15 }
  0x79   :  { %v407_v8 = vpop.permute.xlu0 %406 }
  0x7a   :  { %v409_v10 = vmul.f32 %v407_v8, %v647_v15 }
  0xe1   :  { %v478_v17 = vpop.f32.mrb[0].mxu0  ;;  %v484_v18 = vpop.f32.mrb[0].mxu1 }
  0xe2   :  { %v152_v19 = vadd.f32 %v478_v17, %v432_v16  ;;  %v146_v20 = vpop.f32.mrb[1].mxu0  ;;  %v166_v21 = vpop.f32.mrb[1].mxu1  ;;  %v172_v34 = vadd.f32 %v484_v18, %v432_v16 }
  0xe3   :  { %v147_v22 = vadd.f32 %v432_v16, %v146_v20  ;;  %v167_v29 = vadd.f32 %v432_v16, %v166_v21 }
  0xe4   :  { %v443_v23 = vmul.f32 -1.442695, %v152_v19  ;;  %v447_v36 = vmul.f32 -1.442695, %v172_v34 }
  0xe5   :  { %v442_v24 = vmul.f32 -1.442695, %v147_v22  ;;  %508 = vtanh.f32 %v147_v22  ;;  %v481_v25 = vpop.f32.mrb[2].mxu0  ;;  %v487_v26 = vpop.f32.mrb[2].mxu1  ;;  %v446_v35 = vmul.f32 -1.442695, %v167_v29 }
  0xe6   :  { %510 = vpow2.f32 %v443_v23  ;;  %v162_v27 = vadd.f32 %v481_v25, %v432_v16  ;;  %v156_v28 = vpop.f32.mrb[3].mxu0  ;;  %v176_v30 = vpop.f32.mrb[3].mxu1  ;;  %v182_v40 = vadd.f32 %v487_v26, %v432_v16 }
  0xe7   :  { %512 = vpow2.f32 %v442_v24  ;;  %v157_v31 = vadd.f32 %v432_v16, %v156_v28  ;;  %v177_v37 = vadd.f32 %v432_v16, %v176_v30 }
  0xe8   :  { %v445_v32 = vmul.f32 -1.442695, %v162_v27  ;;  %v449_v48 = vmul.f32 -1.442695, %v182_v40 }
  0xe9   :  { %v444_v33 = vmul.f32 -1.442695, %v157_v31  ;;  %v448_v43 = vmul.f32 -1.442695, %v177_v37 }
  0xea   :  { %514 = vpow2.f32 %v445_v32 }
  0xeb   :  { %516 = vpow2.f32 %v444_v33 }
  0xec   :  { %518 = vpow2.f32 %v446_v35 }
  0xed   :  { %520 = vpow2.f32 %v447_v36 }
  0xef   :  { %v509_v38 = vpop.eup %508 }
  0xf0   :  { %v511_v39 = vpop.eup %510  ;;  %249 = vrot.lane.b32.xlu0 %v509_v38, %s559_s0 }
  0xf1   :  { %v513_v41 = vpop.eup %512  ;;  %v210_v42 = vadd.f32 1.0, %v511_v39 }
  0xf2   :  { %v209_v44 = vadd.f32 1.0, %v513_v41 }
  0xf3   :  { %522 = vrcp.f32 %v210_v42 }
  0xf4   :  { %v515_v46 = vpop.eup %514  ;;  %524 = vrcp.f32 %v209_v44 }
  0xf5   :  { %v517_v47 = vpop.eup %516  ;;  %526 = vpow2.f32 %v448_v43  ;;  %v212_v49 = vadd.f32 1.0, %v515_v46 }
  0xf6   :  { %v211_v50 = vadd.f32 1.0, %v517_v47  ;;  %528 = vtanh.f32 %v152_v19  ;;  %v519_v51 = vpop.eup %518  ;;  %v334_v19 = vld [vmem:[#allocation2] sm:$0xff] }
  0xf7   :  { %v213_v52 = vadd.f32 1.0, %v519_v51  ;;  %v521_v53 = vpop.eup %520 }
  0xf8   :  { %530 = vrcp.f32 %v211_v50  ;;  %v214_v56 = vadd.f32 1.0, %v521_v53 }
  0xf9   :  { %532 = vpow2.f32 %v449_v48 }
  0xfa   :  { %534 = vrcp.f32 %v212_v49 }
  0xfb   :  { %536 = vtanh.f32 %v157_v31 }
  0xfc   :  { %538 = vrcp.f32 %v213_v52 }
  0xfd   :  { %v523_v54 = vpop.eup %522  ;;  %540 = vtanh.f32 %v162_v27 }
  0xfe   :  { %v525_v55 = vpop.eup %524  ;;  %291 = vrot.lane.b32.xlu0 %v523_v54, %s561_s2  ;;  %542 = vrcp.f32 %v214_v56 }
  0xff   :  { %v527_v57 = vpop.eup %526  ;;  %289 = vrot.lane.b32.xlu1 %v525_v55, %s561_s2  ;;  %544 = vtanh.f32 %v167_v29 }
 0x100   :  { %v529_v58 = vpop.eup %528  ;;  %v215_v60 = vadd.f32 1.0, %v527_v57 }
 0x102   :  { %v531_v59 = vpop.eup %530  ;;  %546 = vrcp.f32 %v215_v60 }
 0x103   :  { %v533_v61 = vpop.eup %532  ;;  %293 = vrot.lane.b32.xlu0 %v531_v59, %s561_s2  ;;  %251 = vrot.lane.b32.xlu1 %v529_v58, %s559_s0  ;;  %548 = vtanh.f32 %v172_v34 }
 0x104   :  { %v535_v62 = vpop.eup %534  ;;  %v216_v0 = vadd.f32 1.0, %v533_v61 }
 0x105   :  { %v537_v63 = vpop.eup %536 }
 0x106   :  { %v663_v1 = vpop.eup %538  ;;  %550 = vrcp.f32 %v216_v0 }
 0x107   :  { %295 = vrot.lane.b32.xlu0 %v535_v62, %s561_s2  ;;  %253 = vrot.lane.b32.xlu1 %v537_v63, %s559_s0  ;;  %v541_v2 = vpop.eup %540  ;;  %552 = vtanh.f32 %v177_v37 }
 0x108   :  { %v668_v3 = vpop.eup %542  ;;  %554 = vtanh.f32 %v182_v40 }
 0x109   :  { %v545_v4 = vpop.eup %544 }
 0x10b   :  { %297 = vrot.lane.b32.xlu0 %v663_v1, %s561_s2  ;;  %255 = vrot.lane.b32.xlu1 %v541_v2, %s559_s0 }
 0x10c   :  { %v673_v5 = vpop.eup %546 }
 0x10d   :  { %v549_v6 = vpop.eup %548 }
 0x10f   :  { %299 = vrot.lane.b32.xlu0 %v668_v3, %s561_s2  ;;  %257 = vrot.lane.b32.xlu1 %v545_v4, %s559_s0 }
 0x110   :  { %v678_v7 = vpop.eup %550 }
 0x111   :  { %v553_v9 = vpop.eup %552 }
 0x112   :  { %v555_v11 = vpop.eup %554 }
 0x113   :  { %301 = vrot.lane.b32.xlu0 %v673_v5, %s561_s2  ;;  %259 = vrot.lane.b32.xlu1 %v549_v6, %s559_s0 }
 0x117   :  { %303 = vrot.lane.b32.xlu0 %v678_v7, %s561_s2  ;;  %261 = vrot.lane.b32.xlu1 %v553_v9, %s559_s0 }
 0x11b   :  { %263 = vrot.lane.b32.xlu1 %v555_v11, %s559_s0  ;;  %411 = vrot.lane.b32.xlu0 %v409_v10, %s562_s26  ;;  %v450_v11 = vld [vmem:[%s724_s3] ss:$0 sm:$0xff] }
 0x11f   :  { %330 = vrot.lane.b32.xlu1 %v678_v7, %s563_s27 }
 0x162   :  { %v250_v12 = vpop.permute.xlu0 %249 }
 0x163   :  { %v273_v13 = vmul.f32 %v525_v55, %v250_v12 }
 0x165   :  { %322 = vst.msk [vmem:[#allocation5] sm:$0xff] %vm29_vm2, %v273_v13 }
 0x16c   :  { %v337_v25 = vld [vmem:[#allocation5] sm:$0xff] }
 0x170   :  { %v292_v14 = vpop.permute.xlu0 %291 }
 0x171   :  { %315 = vst.msk [vmem:[#allocation4 + $0x8] sm:$0xff] %vm29_vm2, %v292_v14  ;;  %v290_v16 = vpop.permute.xlu1 %289 }
 0x172   :  { %314 = vst.msk [vmem:[#allocation4] sm:$0xff] %vm29_vm2, %v290_v16 }
 0x175   :  { %v294_v17 = vpop.permute.xlu0 %293  ;;  %v252_v15 = vpop.permute.xlu1 %251 }
 0x176   :  { %316 = vst.msk [vmem:[#allocation4 + $0x10] sm:$0xff] %vm29_vm2, %v294_v17  ;;  %v274_v18 = vmul.f32 %v523_v54, %v252_v15 }
 0x178   :  { %323 = vst.msk [vmem:[#allocation5 + $0x8] sm:$0xff] %vm29_vm2, %v274_v18  ;;  %v340_v27 = vld [vmem:[#allocation4 + $0x8] sm:$0xff] }
 0x179   :  { %v296_v20 = vpop.permute.xlu0 %295  ;;  %v254_v21 = vpop.permute.xlu1 %253  ;;  %v335_v22 = vld [vmem:[#allocation4] sm:$0xff] }
 0x17a   :  { %317 = vst.msk [vmem:[#allocation4 + $0x18] sm:$0xff] %vm29_vm2, %v296_v20  ;;  %v275_v23 = vmul.f32 %v531_v59, %v254_v21  ;;  %v336_v24 = vmul.f32 %v335_v22, %v334_v19 }
 0x17c   :  { %324 = vst.msk [vmem:[#allocation5 + $0x10] sm:$0xff] %vm29_vm2, %v275_v23  ;;  %v338_v26 = vadd.f32 %v337_v25, %v336_v24 }
 0x17d   :  { %v298_v28 = vpop.permute.xlu0 %297  ;;  %v256_v29 = vpop.permute.xlu1 %255  ;;  %v346_v32 = vld [vmem:[#allocation4 + $0x10] sm:$0xff] }
 0x17e   :  { %318 = vst.msk [vmem:[#allocation4 + $0x20] sm:$0xff] %vm29_vm2, %v298_v28  ;;  %v276_v30 = vmul.f32 %v535_v62, %v256_v29  ;;  %v341_v31 = vmul.f32 %v340_v27, %v338_v26 }
 0x17f   :  { %v343_v33 = vld [vmem:[#allocation5 + $0x8] sm:$0xff] }
 0x180   :  { %325 = vst.msk [vmem:[#allocation5 + $0x18] sm:$0xff] %vm29_vm2, %v276_v30  ;;  %v344_v34 = vadd.f32 %v343_v33, %v341_v31 }
 0x181   :  { %v300_v35 = vpop.permute.xlu0 %299  ;;  %v258_v36 = vpop.permute.xlu1 %257  ;;  %v352_v41 = vld [vmem:[#allocation4 + $0x18] sm:$0xff] }
 0x182   :  { %319 = vst.msk [vmem:[#allocation4 + $0x28] sm:$0xff] %vm29_vm2, %v300_v35  ;;  %v277_v37 = vmul.f32 %v663_v1, %v258_v36  ;;  %v347_v38 = vmul.f32 %v346_v32, %v344_v34 }
 0x183   :  { %v349_v39 = vld [vmem:[#allocation5 + $0x10] sm:$0xff] }
 0x184   :  { %326 = vst.msk [vmem:[#allocation5 + $0x20] sm:$0xff] %vm29_vm2, %v277_v37  ;;  %v350_v40 = vadd.f32 %v349_v39, %v347_v38 }
 0x185   :  { %v302_v42 = vpop.permute.xlu0 %301  ;;  %v260_v43 = vpop.permute.xlu1 %259  ;;  %v358_v47 = vld [vmem:[#allocation4 + $0x20] sm:$0xff] }
 0x186   :  { %320 = vst.msk [vmem:[#allocation4 + $0x30] sm:$0xff] %vm29_vm2, %v302_v42  ;;  %v278_v44 = vmul.f32 %v668_v3, %v260_v43  ;;  %v353_v45 = vmul.f32 %v352_v41, %v350_v40 }
 0x187   :  { %v355_v46 = vld [vmem:[#allocation5 + $0x18] sm:$0xff] }
 0x188   :  { %327 = vst.msk [vmem:[#allocation5 + $0x28] sm:$0xff] %vm29_vm2, %v278_v44  ;;  %v356_v48 = vadd.f32 %v355_v46, %v353_v45 }
 0x189   :  { %v304_v49 = vpop.permute.xlu0 %303  ;;  %v262_v50 = vpop.permute.xlu1 %261  ;;  %v364_v57 = vld [vmem:[#allocation4 + $0x28] sm:$0xff] }
 0x18a   :  { %321 = vst.msk [vmem:[#allocation4 + $0x38] sm:$0xff] %vm29_vm2, %v304_v49  ;;  %v279_v51 = vmul.f32 %v673_v5, %v262_v50  ;;  %v359_v52 = vmul.f32 %v358_v47, %v356_v48 }
 0x18b   :  { %v361_v53 = vld [vmem:[#allocation5 + $0x20] sm:$0xff] }
 0x18c   :  { %328 = vst.msk [vmem:[#allocation5 + $0x30] sm:$0xff] %vm29_vm2, %v279_v51  ;;  %v362_v54 = vadd.f32 %v361_v53, %v359_v52 }
 0x18d   :  { %v264_v55 = vpop.permute.xlu1 %263  ;;  %v412_v56 = vpop.permute.xlu0 %411  ;;  %v370_v62 = vld [vmem:[#allocation4 + $0x30] sm:$0xff] }
 0x18e   :  { %v280_v58 = vmul.f32 %v678_v7, %v264_v55  ;;  %v414_v59 = vsel %vm29_vm2, %v412_v56, 0.0  ;;  %v365_v60 = vmul.f32 %v364_v57, %v362_v54  ;;  %v11_v7 = vstv %s723_s5 }
 0x18f   :  { %415 = vadd.xlane.f32.xlu0 %v414_v59  ;;  %v367_v61 = vld [vmem:[#allocation5 + $0x28] sm:$0xff]  ;;  %12 = vst [vmem:[#allocation6] sm:$0x1] %v11_v7 }
 0x190   :  { %329 = vst.msk [vmem:[#allocation5 + $0x38] sm:$0xff] %vm29_vm2, %v280_v58  ;;  %v368_v63 = vadd.f32 %v367_v61, %v365_v60 }
 0x191   :  { %v331_v0 = vpop.permute.xlu1 %330  ;;  %v376_v4 = vld [vmem:[#allocation4 + $0x38] sm:$0xff] }
 0x192   :  { %333 = vst.msk [vmem:[#allocation3] sm:$0xff] %vm29_vm2, %v331_v0  ;;  %v371_v1 = vmul.f32 %v370_v62, %v368_v63 }
 0x193   :  { %v373_v2 = vld [vmem:[#allocation5 + $0x30] sm:$0xff] }
 0x194   :  { %v374_v3 = vadd.f32 %v373_v2, %v371_v1 }
 0x196   :  { %v377_v5 = vmul.f32 %v376_v4, %v374_v3  ;;  %v452_v17 = vld [vmem:[#allocation6] ss:$0 sm:$0xff] }
 0x197   :  { %v379_v6 = vld [vmem:[#allocation5 + $0x38] sm:$0xff] }
 0x198   :  { %v380_v8 = vadd.f32 %v379_v6, %v377_v5 }
 0x199   :  { %v385_v10 = vld [vmem:[#allocation3] sm:$0xff] }
 0x19a   :  { %556 = vtanh.f32 %v380_v8  ;;  %381 = vst.msk [vmem:[#allocation2] sm:$0xff] %vm29_vm2, %v380_v8 }
 0x1a4   :  { %v557_v9 = vpop.eup %556 }
 0x1a5   :  { %v387_v12 = vmul.f32 %v557_v9, %v385_v10 }
 0x1a7   :  { %v396_v13 = vmul.f32 %v450_v11, %v387_v12 }
 0x1a9   :  { %v397_v14 = vsel %vm29_vm2, %v396_v13, 0.0 }
 0x1aa   :  { %398 = vadd.xlane.f32.xlu1 %v397_v14 }
 0x21c   :  { %v416_v16 = vpop.xlane.xlu0 %415 }
 0x237   :  { %v399_v15 = vpop.xlane.xlu1 %398 }
 0x238   :  { %v417_v18 = vadd.f32 %v416_v16, %v399_v15 }
 0x23a   :  { %v425_v19 = vadd.f32 %v452_v17, %v417_v18 }
 0x23c   :  { %427 = vst.msk [vmem:[%s725_s6] sm:$0xff] %vm426_vm3, %v425_v19 }

</bundles_post_ra>
